<compile_context>
chip_gen: v6e
topology: v6e:2x2x1
jax: 0.10.0
libtpu: 0.0.40
codegen_flags: <defaults>
</compile_context>

<pallas_src>
import jax
import jax.numpy as jnp
from jax.experimental import pallas as pl
from jax.experimental.pallas import tpu as pltpu


def _round_up(x, m):
    return (x + m - 1) // m * m


def _slab_offsets(per_floor_dim, scalar_dim, embedding_dim,
                  floor_hidden_dim, global_hidden_dim, num_layers):
    """Sublane offsets of each weight block inside the packed (R, H) slab.

    Every block starts at a multiple of 8 sublanes; lane width is H (=128)
    everywhere (narrow blocks are zero-padded on the lane axis).
    """
    P, S, E, H = per_floor_dim, scalar_dim, embedding_dim, global_hidden_dim
    Sp, Ep = _round_up(S, 8), _round_up(E, 8)
    offs = {}
    offs["floor"] = 0                                      # (Pp, H)  lanes >= FH zero
    offs["g1_agg"] = _round_up(P, 8)                       # (H, H)   rows  >= FH zero
    offs["g1_se"] = offs["g1_agg"] + H                     # (Sp+Ep, H): [scl|0|emb|0] rows
    offs["g_extra"] = offs["g1_se"] + Sp + Ep              # (num_layers-1) x (H, H)
    offs["head"] = offs["g_extra"] + (num_layers - 1) * H  # (H, H)   lanes >= A+1 zero
    offs["total"] = offs["head"] + H
    offs["se_width"] = Sp + Ep
    return offs


def _pick_batch_tile(batch):
    """Rows of the batch handled per grid step.

    Single grid step for small/medium batches: v5e/v6e have one TensorCore, so
    extra grid steps are pure per-step overhead.  Only split when each step
    still gets >= 64 rows of work (then a v7x 2-TC "parallel" split pays), and
    keep tiles 8-aligned.
    """
    if batch < 128:
        return batch
    for tb in (512, 256, 128, 64):
        if batch % tb == 0:
            return tb
    return batch


def init_params(key, *, per_floor_dim, scalar_dim, embedding_dim,
                floor_hidden_dim=32, global_hidden_dim=128,
                num_layers=2, num_actions=4):
    """Deterministic synthetic parameters.

    Weights are stored transposed as (in, out) relative to torch.nn.Linear
    (so forward computes x @ W + b); biases are 1-D (out,).
    """
    H = global_hidden_dim
    keys = jax.random.split(key, 2 * (num_layers + 3))
    key_it = iter(keys)

    def lin(fan_in, fan_out):
        kw, kb = next(key_it), next(key_it)
        w = jax.random.normal(kw, (fan_in, fan_out), jnp.float32) * 0.1
        b = jax.random.normal(kb, (fan_out,), jnp.float32) * 0.1
        return w, b

    p = {}
    p["wf"], p["bf"] = lin(per_floor_dim, floor_hidden_dim)
    g_in = floor_hidden_dim + scalar_dim + embedding_dim
    p["wg1"], p["bg1"] = lin(g_in, H)
    for l in range(num_layers - 1):
        p[f"wg{l + 2}"], p[f"bg{l + 2}"] = lin(H, H)
    p["wa"], p["ba"] = lin(H, num_actions)
    p["wc"], p["bc"] = lin(H, 1)
    return p


def pack_params(params, *, per_floor_dim, scalar_dim, embedding_dim,
                floor_hidden_dim=32, global_hidden_dim=128,
                num_layers=2, num_actions=4, weight_dtype=jnp.bfloat16):
    """Pack all weights into one (R, H) slab and all biases into one (L+2, H) slab.

    Intended to be called ONCE outside the rollout hot loop.
    """
    P, S, E = per_floor_dim, scalar_dim, embedding_dim
    FH, H, A = floor_hidden_dim, global_hidden_dim, num_actions
    assert H % 128 == 0 and FH <= H and (A + 1) <= H
    offs = _slab_offsets(P, S, E, FH, H, num_layers)
    Sp, Ep = _round_up(S, 8), _round_up(E, 8)

    def lane_pad(w):
        return jnp.pad(w, ((0, 0), (0, H - w.shape[1])))

    def row_pad(w, rows):
        return jnp.pad(w, ((0, rows - w.shape[0]), (0, 0)))

    wg1 = params["wg1"]
    blocks = [
        row_pad(lane_pad(params["wf"]), offs["g1_agg"]),        # floor weights (Pp, H)
        row_pad(wg1[:FH], H),                                   # agg rows, K padded to H
        row_pad(wg1[FH:FH + S], Sp),                            # scalar rows (+ zero pad)
        row_pad(wg1[FH + S:FH + S + E], Ep),                    # embed rows (+ zero pad)
    ]
    for l in range(num_layers - 1):
        blocks.append(params[f"wg{l + 2}"])                     # (H, H)
    blocks.append(lane_pad(jnp.concatenate([params["wa"], params["wc"]], axis=1)))
    w_slab = jnp.concatenate(blocks, axis=0).astype(weight_dtype)
    assert w_slab.shape == (offs["total"], H)

    def bias_row(b):
        return jnp.pad(b, (0, H - b.shape[0]))

    bias_rows = [bias_row(params["bf"]), bias_row(params["bg1"])]
    for l in range(num_layers - 1):
        bias_rows.append(bias_row(params[f"bg{l + 2}"]))
    bias_rows.append(bias_row(jnp.concatenate([params["ba"], params["bc"]], axis=0)))
    b_slab = jnp.stack(bias_rows, axis=0).astype(jnp.float32)
    return w_slab, b_slab


def elevator_actor_critic_forward(per_floor_obs, scalar_obs, action_embed,
                                  w_slab, b_slab, *,
                                  floor_hidden_dim=32, global_hidden_dim=128,
                                  num_layers=2, num_actions=4, batch_tile=None):
    """Pallas forward. Returns (action_logits (B, A), value (B, 1))."""
    B, F, P = per_floor_obs.shape
    S = scalar_obs.shape[-1]
    E = action_embed.shape[-1]
    FH, H, A = floor_hidden_dim, global_hidden_dim, num_actions
    offs = _slab_offsets(P, S, E, FH, H, num_layers)
    R = offs["total"]
    SE = offs["se_width"]
    Pp = offs["g1_agg"]                      # per-floor input width padded to 8
    Sp = _round_up(S, 8)
    assert w_slab.shape == (R, H), (w_slab.shape, (R, H))
    assert b_slab.shape == (num_layers + 2, H), (b_slab.shape, (num_layers + 2, H))

    TB = batch_tile if batch_tile is not None else _pick_batch_tile(B)
    assert B % TB == 0 and (TB == B or TB % 8 == 0)
    grid = (B // TB,)

    f32 = jnp.float32
    cdt = w_slab.dtype                       # bf16 MXU operands, f32 accumulation

    # Wrapper-side prep (cheap XLA ops, done once per forward):
    #  * floor-major layout so the kernel slices contiguous (TB, Pp) blocks per floor
    #  * inputs pre-cast to bf16 (halves input DMA, no in-kernel converts)
    #  * scalar + embed merged into one 8-aligned stream matching the slab padding
    pf_t = jnp.transpose(per_floor_obs, (1, 0, 2)).astype(cdt)          # (F, B, P)
    pf_t = jnp.pad(pf_t, ((0, 0), (0, 0), (0, Pp - P)))                 # (F, B, Pp)
    se = jnp.concatenate(
        [scalar_obs, jnp.zeros((B, Sp - S), scalar_obs.dtype),
         action_embed, jnp.zeros((B, SE - Sp - E), action_embed.dtype)],
        axis=-1).astype(cdt)                                            # (B, SE)

    def kernel(pf_ref, se_ref, w_ref, b_ref, out_ref):
        # ---- per-floor net + mean over floors: per-floor accumulation in f32 ----
        wf = w_ref[pl.ds(offs["floor"], Pp), :]          # (Pp, H), lanes >= FH zero
        bf = b_ref[0:1, :]
        acc = jnp.zeros((TB, H), f32)
        for f in range(F):                               # static, unrolled
            z = jnp.dot(pf_ref[f], wf, preferred_element_type=f32) + bf
            acc = acc + jnp.maximum(z, 0.0)              # (TB, H) live, lanes>=FH stay 0
        agg = acc * (1.0 / F)                            # mean over floors (f32)

        # ---- global layer 1, split-K (replaces torch.cat([agg, scalar, embed])) ----
        h = (jnp.dot(agg.astype(cdt), w_ref[pl.ds(offs["g1_agg"], H), :],
                     preferred_element_type=f32)
             + jnp.dot(se_ref[...], w_ref[pl.ds(offs["g1_se"], SE), :],
                       preferred_element_type=f32)
             + b_ref[1:2, :])
        h = jnp.maximum(h, 0.0)

        # ---- remaining hidden layers (num_layers - 1 of them) ----
        for l in range(num_layers - 1):
            w = w_ref[pl.ds(offs["g_extra"] + l * H, H), :]
            h = jnp.dot(h.astype(cdt), w, preferred_element_type=f32) \
                + b_ref[2 + l:3 + l, :]
            h = jnp.maximum(h, 0.0)

        # ---- fused actor + critic head: one lane-dense (TB, H) unmasked store ----
        wh = w_ref[pl.ds(offs["head"], H), :]
        out_ref[...] = (jnp.dot(h.astype(cdt), wh, preferred_element_type=f32)
                        + b_ref[num_layers + 1:num_layers + 2, :])

    flops = 2 * B * (F * Pp * H + H * H + SE * H
                     + (num_layers - 1) * H * H + H * H)
    bytes_accessed = (pf_t.size * pf_t.dtype.itemsize
                      + se.size * se.dtype.itemsize
                      + B * H * 4
                      + w_slab.size * w_slab.dtype.itemsize
                      + b_slab.size * 4)

    out = pl.pallas_call(
        kernel,
        out_shape=jax.ShapeDtypeStruct((B, H), f32),
        grid_spec=pltpu.PrefetchScalarGridSpec(
            num_scalar_prefetch=0,
            grid=grid,
            in_specs=[
                pl.BlockSpec((F, TB, Pp), lambda i: (0, i, 0)),
                pl.BlockSpec((TB, SE), lambda i: (i, 0)),
                # Parameters: constant block index -> DMA'd once, stay VMEM-resident.
                pl.BlockSpec((R, H), lambda i: (0, 0)),
                pl.BlockSpec((num_layers + 2, H), lambda i: (0, 0)),
            ],
            out_specs=pl.BlockSpec((TB, H), lambda i: (i, 0)),
        ),
        compiler_params=pltpu.CompilerParams(dimension_semantics=("parallel",)),
        cost_estimate=pl.CostEstimate(flops=int(flops), transcendentals=0,
                                      bytes_accessed=int(bytes_accessed)),
    )(pf_t, se, w_slab, b_slab)

    logits = out[:, :A]          # actor head
    value = out[:, A:A + 1]      # critic head
    return logits, value


# ---------------------------------------------------------------------------
# Pure-JAX references for validation
# ---------------------------------------------------------------------------

def reference_forward_f32(per_floor_obs, scalar_obs, action_embed, params, *, num_layers=2):
    """Exact f32 mirror of the PyTorch module."""
    B, F, P = per_floor_obs.shape
    fr = jnp.maximum(per_floor_obs.reshape(B * F, P) @ params["wf"] + params["bf"], 0.0)
    agg = fr.reshape(B, F, -1).mean(axis=1)
    x = jnp.concatenate([agg, scalar_obs, action_embed], axis=-1)
    h = jnp.maximum(x @ params["wg1"] + params["bg1"], 0.0)
    for l in range(num_layers - 1):
        h = jnp.maximum(h @ params[f"wg{l + 2}"] + params[f"bg{l + 2}"], 0.0)
    return h @ params["wa"] + params["ba"], h @ params["wc"] + params["bc"]


def reference_forward_bf16(per_floor_obs, scalar_obs, action_embed, params, *,
                           floor_hidden_dim=32, num_layers=2, weight_dtype=jnp.bfloat16):
    """Mirror of the kernel's numerics (bf16 MXU operands, f32 accumulation)."""
    def mm(a, w):
        return jnp.dot(a.astype(weight_dtype), w.astype(weight_dtype),
                       preferred_element_type=jnp.float32)

    B, F, P = per_floor_obs.shape
    FH = floor_hidden_dim
    S = scalar_obs.shape[-1]
    fr = jnp.maximum(mm(per_floor_obs.reshape(B * F, P), params["wf"]) + params["bf"], 0.0)
    agg = fr.reshape(B, F, -1).mean(axis=1)
    wg1 = params["wg1"]
    h = (mm(agg, wg1[:FH]) + mm(scalar_obs, wg1[FH:FH + S])
         + mm(action_embed, wg1[FH + S:]) + params["bg1"])
    h = jnp.maximum(h, 0.0)
    for l in range(num_layers - 1):
        h = jnp.maximum(mm(h, params[f"wg{l + 2}"]) + params[f"bg{l + 2}"], 0.0)
    return mm(h, params["wa"]) + params["ba"], mm(h, params["wc"]) + params["bc"]


if __name__ == "__main__":
    # Small shapes consistent with the module's forward signature.
    batch, num_floors = 16, 6
    per_floor_dim, scalar_dim, embedding_dim = 11, 5, 8
    floor_hidden_dim, global_hidden_dim = 32, 128
    num_layers, num_actions = 2, 4

    key = jax.random.PRNGKey(0)
    k_par, k_pf, k_sc, k_em = jax.random.split(key, 4)
    per_floor_obs = jax.random.normal(k_pf, (batch, num_floors, per_floor_dim), jnp.float32)
    scalar_obs = jax.random.normal(k_sc, (batch, scalar_dim), jnp.float32)
    action_embed = jax.random.normal(k_em, (batch, embedding_dim), jnp.float32)

    params = init_params(k_par, per_floor_dim=per_floor_dim, scalar_dim=scalar_dim,
                         embedding_dim=embedding_dim, floor_hidden_dim=floor_hidden_dim,
                         global_hidden_dim=global_hidden_dim, num_layers=num_layers,
                         num_actions=num_actions)
    # Pack once (outside the rollout hot loop): one bf16 weight slab + one f32 bias slab.
    w_slab, b_slab = pack_params(params, per_floor_dim=per_floor_dim, scalar_dim=scalar_dim,
                                 embedding_dim=embedding_dim, floor_hidden_dim=floor_hidden_dim,
                                 global_hidden_dim=global_hidden_dim, num_layers=num_layers,
                                 num_actions=num_actions, weight_dtype=jnp.bfloat16)

    logits, value = elevator_actor_critic_forward(
        per_floor_obs, scalar_obs, action_embed, w_slab, b_slab,
        floor_hidden_dim=floor_hidden_dim, global_hidden_dim=global_hidden_dim,
        num_layers=num_layers, num_actions=num_actions)
    jax.block_until_ready((logits, value))

    assert logits.shape == (batch, num_actions)
    assert value.shape == (batch, 1)

    # Tight check against a reference with the same bf16-operand / f32-accumulate numerics.
    ref_l16, ref_v16 = reference_forward_bf16(
        per_floor_obs, scalar_obs, action_embed, params,
        floor_hidden_dim=floor_hidden_dim, num_layers=num_layers)
    assert jnp.allclose(logits, ref_l16, atol=1e-2, rtol=1e-2)
    assert jnp.allclose(value, ref_v16, atol=1e-2, rtol=1e-2)

    # Looser sanity check against the exact f32 PyTorch semantics.
    ref_l32, ref_v32 = reference_forward_f32(
        per_floor_obs, scalar_obs, action_embed, params, num_layers=num_layers)
    assert jnp.allclose(logits, ref_l32, atol=5e-2, rtol=5e-2)
    assert jnp.allclose(value, ref_v32, atol=5e-2, rtol=5e-2)

    print("KERNEL_OK")
</pallas_src>

<mosaic_0001>
module attributes {stable_mosaic.version = 11 : i64} {
  func.func @kernel(%arg0: i32, %arg1: memref<6x16x16xbf16, #tpu.memory_space<vmem>>, %arg2: memref<16x16xbf16, #tpu.memory_space<vmem>>, %arg3: memref<416x128xbf16, #tpu.memory_space<vmem>>, %arg4: memref<4x128xf32, #tpu.memory_space<vmem>>, %arg5: memref<16x128xf32, #tpu.memory_space<vmem>>) attributes {dimension_semantics = [#tpu.dimension_semantics<parallel>], iteration_bounds = array<i64: 1>, scalar_prefetch = 0 : i64, scratch_operands = 0 : i64, tpu.core_type = #tpu.core_type<tc>, window_params = [{transform_indices = @transform_0, window_bounds = array<i64: 6, 16, 16>}, {transform_indices = @transform_1, window_bounds = array<i64: 16, 16>}, {pipeline_mode = #tpu.pipeline_mode<synchronous>, transform_indices = @transform_2, window_bounds = array<i64: 416, 128>}, {pipeline_mode = #tpu.pipeline_mode<synchronous>, transform_indices = @transform_3, window_bounds = array<i64: 4, 128>}, {transform_indices = @transform_4, window_bounds = array<i64: 16, 128>}]} {
    %c0 = arith.constant 0 : index
    %c0_0 = arith.constant 0 : index
    %0 = vector.load %arg3[%c0, %c0_0] : memref<416x128xbf16, #tpu.memory_space<vmem>>, vector<16x128xbf16>
    %c0_1 = arith.constant 0 : index
    %c0_2 = arith.constant 0 : index
    %1 = vector.load %arg4[%c0_1, %c0_2] : memref<4x128xf32, #tpu.memory_space<vmem>>, vector<1x128xf32>
    %cst = arith.constant 0.000000e+00 : f32
    %2 = vector.broadcast %cst : f32 to vector<16x128xf32>
    %c0_3 = arith.constant 0 : index
    %c0_4 = arith.constant 0 : index
    %c0_5 = arith.constant 0 : index
    %3 = vector.load %arg1[%c0_3, %c0_4, %c0_5] : memref<6x16x16xbf16, #tpu.memory_space<vmem>>, vector<1x16x16xbf16>
    %4 = vector.shape_cast %3 : vector<1x16x16xbf16> to vector<16x16xbf16>
    %cst_6 = arith.constant dense<0.000000e+00> : vector<16x128xf32>
    %5 = tpu.matmul %4, %0, %cst_6 {dimension_numbers = #tpu.dot_dimension_numbers<[1], [0], [0], [1], [0, 0, 1, 1], [], []>} : vector<16x16xbf16>, vector<16x128xbf16>, vector<16x128xf32> -> vector<16x128xf32>
    %6 = vector.broadcast %1 : vector<1x128xf32> to vector<16x128xf32>
    %7 = arith.addf %5, %6 : vector<16x128xf32>
    %cst_7 = arith.constant 0.000000e+00 : f32
    %8 = vector.broadcast %cst_7 : f32 to vector<16x128xf32>
    %9 = arith.maximumf %7, %8 : vector<16x128xf32>
    %10 = arith.addf %2, %9 : vector<16x128xf32>
    %c1 = arith.constant 1 : index
    %c0_8 = arith.constant 0 : index
    %c0_9 = arith.constant 0 : index
    %11 = vector.load %arg1[%c1, %c0_8, %c0_9] : memref<6x16x16xbf16, #tpu.memory_space<vmem>>, vector<1x16x16xbf16>
    %12 = vector.shape_cast %11 : vector<1x16x16xbf16> to vector<16x16xbf16>
    %cst_10 = arith.constant dense<0.000000e+00> : vector<16x128xf32>
    %13 = tpu.matmul %12, %0, %cst_10 {dimension_numbers = #tpu.dot_dimension_numbers<[1], [0], [0], [1], [0, 0, 1, 1], [], []>} : vector<16x16xbf16>, vector<16x128xbf16>, vector<16x128xf32> -> vector<16x128xf32>
    %14 = vector.broadcast %1 : vector<1x128xf32> to vector<16x128xf32>
    %15 = arith.addf %13, %14 : vector<16x128xf32>
    %cst_11 = arith.constant 0.000000e+00 : f32
    %16 = vector.broadcast %cst_11 : f32 to vector<16x128xf32>
    %17 = arith.maximumf %15, %16 : vector<16x128xf32>
    %18 = arith.addf %10, %17 : vector<16x128xf32>
    %c2 = arith.constant 2 : index
    %c0_12 = arith.constant 0 : index
    %c0_13 = arith.constant 0 : index
    %19 = vector.load %arg1[%c2, %c0_12, %c0_13] : memref<6x16x16xbf16, #tpu.memory_space<vmem>>, vector<1x16x16xbf16>
    %20 = vector.shape_cast %19 : vector<1x16x16xbf16> to vector<16x16xbf16>
    %cst_14 = arith.constant dense<0.000000e+00> : vector<16x128xf32>
    %21 = tpu.matmul %20, %0, %cst_14 {dimension_numbers = #tpu.dot_dimension_numbers<[1], [0], [0], [1], [0, 0, 1, 1], [], []>} : vector<16x16xbf16>, vector<16x128xbf16>, vector<16x128xf32> -> vector<16x128xf32>
    %22 = vector.broadcast %1 : vector<1x128xf32> to vector<16x128xf32>
    %23 = arith.addf %21, %22 : vector<16x128xf32>
    %cst_15 = arith.constant 0.000000e+00 : f32
    %24 = vector.broadcast %cst_15 : f32 to vector<16x128xf32>
    %25 = arith.maximumf %23, %24 : vector<16x128xf32>
    %26 = arith.addf %18, %25 : vector<16x128xf32>
    %c3 = arith.constant 3 : index
    %c0_16 = arith.constant 0 : index
    %c0_17 = arith.constant 0 : index
    %27 = vector.load %arg1[%c3, %c0_16, %c0_17] : memref<6x16x16xbf16, #tpu.memory_space<vmem>>, vector<1x16x16xbf16>
    %28 = vector.shape_cast %27 : vector<1x16x16xbf16> to vector<16x16xbf16>
    %cst_18 = arith.constant dense<0.000000e+00> : vector<16x128xf32>
    %29 = tpu.matmul %28, %0, %cst_18 {dimension_numbers = #tpu.dot_dimension_numbers<[1], [0], [0], [1], [0, 0, 1, 1], [], []>} : vector<16x16xbf16>, vector<16x128xbf16>, vector<16x128xf32> -> vector<16x128xf32>
    %30 = vector.broadcast %1 : vector<1x128xf32> to vector<16x128xf32>
    %31 = arith.addf %29, %30 : vector<16x128xf32>
    %cst_19 = arith.constant 0.000000e+00 : f32
    %32 = vector.broadcast %cst_19 : f32 to vector<16x128xf32>
    %33 = arith.maximumf %31, %32 : vector<16x128xf32>
    %34 = arith.addf %26, %33 : vector<16x128xf32>
    %c4 = arith.constant 4 : index
    %c0_20 = arith.constant 0 : index
    %c0_21 = arith.constant 0 : index
    %35 = vector.load %arg1[%c4, %c0_20, %c0_21] : memref<6x16x16xbf16, #tpu.memory_space<vmem>>, vector<1x16x16xbf16>
    %36 = vector.shape_cast %35 : vector<1x16x16xbf16> to vector<16x16xbf16>
    %cst_22 = arith.constant dense<0.000000e+00> : vector<16x128xf32>
    %37 = tpu.matmul %36, %0, %cst_22 {dimension_numbers = #tpu.dot_dimension_numbers<[1], [0], [0], [1], [0, 0, 1, 1], [], []>} : vector<16x16xbf16>, vector<16x128xbf16>, vector<16x128xf32> -> vector<16x128xf32>
    %38 = vector.broadcast %1 : vector<1x128xf32> to vector<16x128xf32>
    %39 = arith.addf %37, %38 : vector<16x128xf32>
    %cst_23 = arith.constant 0.000000e+00 : f32
    %40 = vector.broadcast %cst_23 : f32 to vector<16x128xf32>
    %41 = arith.maximumf %39, %40 : vector<16x128xf32>
    %42 = arith.addf %34, %41 : vector<16x128xf32>
    %c5 = arith.constant 5 : index
    %c0_24 = arith.constant 0 : index
    %c0_25 = arith.constant 0 : index
    %43 = vector.load %arg1[%c5, %c0_24, %c0_25] : memref<6x16x16xbf16, #tpu.memory_space<vmem>>, vector<1x16x16xbf16>
    %44 = vector.shape_cast %43 : vector<1x16x16xbf16> to vector<16x16xbf16>
    %cst_26 = arith.constant dense<0.000000e+00> : vector<16x128xf32>
    %45 = tpu.matmul %44, %0, %cst_26 {dimension_numbers = #tpu.dot_dimension_numbers<[1], [0], [0], [1], [0, 0, 1, 1], [], []>} : vector<16x16xbf16>, vector<16x128xbf16>, vector<16x128xf32> -> vector<16x128xf32>
    %46 = vector.broadcast %1 : vector<1x128xf32> to vector<16x128xf32>
    %47 = arith.addf %45, %46 : vector<16x128xf32>
    %cst_27 = arith.constant 0.000000e+00 : f32
    %48 = vector.broadcast %cst_27 : f32 to vector<16x128xf32>
    %49 = arith.maximumf %47, %48 : vector<16x128xf32>
    %50 = arith.addf %42, %49 : vector<16x128xf32>
    %cst_28 = arith.constant 0.166666672 : f32
    %51 = vector.broadcast %cst_28 : f32 to vector<16x128xf32>
    %52 = arith.mulf %50, %51 : vector<16x128xf32>
    %53 = arith.truncf %52 : vector<16x128xf32> to vector<16x128xbf16>
    %c16 = arith.constant 16 : index
    %c0_29 = arith.constant 0 : index
    %54 = vector.load %arg3[%c16, %c0_29] : memref<416x128xbf16, #tpu.memory_space<vmem>>, vector<128x128xbf16>
    %cst_30 = arith.constant dense<0.000000e+00> : vector<16x128xf32>
    %55 = tpu.matmul %53, %54, %cst_30 {dimension_numbers = #tpu.dot_dimension_numbers<[1], [0], [0], [1], [0, 0, 1, 1], [], []>} : vector<16x128xbf16>, vector<128x128xbf16>, vector<16x128xf32> -> vector<16x128xf32>
    %c0_31 = arith.constant 0 : index
    %c0_32 = arith.constant 0 : index
    %56 = vector.load %arg2[%c0_31, %c0_32] : memref<16x16xbf16, #tpu.memory_space<vmem>>, vector<16x16xbf16>
    %c144 = arith.constant 144 : index
    %c0_33 = arith.constant 0 : index
    %57 = vector.load %arg3[%c144, %c0_33] : memref<416x128xbf16, #tpu.memory_space<vmem>>, vector<16x128xbf16>
    %cst_34 = arith.constant dense<0.000000e+00> : vector<16x128xf32>
    %58 = tpu.matmul %56, %57, %cst_34 {dimension_numbers = #tpu.dot_dimension_numbers<[1], [0], [0], [1], [0, 0, 1, 1], [], []>} : vector<16x16xbf16>, vector<16x128xbf16>, vector<16x128xf32> -> vector<16x128xf32>
    %59 = arith.addf %55, %58 : vector<16x128xf32>
    %c1_35 = arith.constant 1 : index
    %c0_36 = arith.constant 0 : index
    %60 = vector.load %arg4[%c1_35, %c0_36] : memref<4x128xf32, #tpu.memory_space<vmem>>, vector<1x128xf32>
    %61 = vector.broadcast %60 : vector<1x128xf32> to vector<16x128xf32>
    %62 = arith.addf %59, %61 : vector<16x128xf32>
    %cst_37 = arith.constant 0.000000e+00 : f32
    %63 = vector.broadcast %cst_37 : f32 to vector<16x128xf32>
    %64 = arith.maximumf %62, %63 : vector<16x128xf32>
    %c160 = arith.constant 160 : index
    %c0_38 = arith.constant 0 : index
    %65 = vector.load %arg3[%c160, %c0_38] : memref<416x128xbf16, #tpu.memory_space<vmem>>, vector<128x128xbf16>
    %66 = arith.truncf %64 : vector<16x128xf32> to vector<16x128xbf16>
    %cst_39 = arith.constant dense<0.000000e+00> : vector<16x128xf32>
    %67 = tpu.matmul %66, %65, %cst_39 {dimension_numbers = #tpu.dot_dimension_numbers<[1], [0], [0], [1], [0, 0, 1, 1], [], []>} : vector<16x128xbf16>, vector<128x128xbf16>, vector<16x128xf32> -> vector<16x128xf32>
    %c2_40 = arith.constant 2 : index
    %c0_41 = arith.constant 0 : index
    %68 = vector.load %arg4[%c2_40, %c0_41] : memref<4x128xf32, #tpu.memory_space<vmem>>, vector<1x128xf32>
    %69 = vector.broadcast %68 : vector<1x128xf32> to vector<16x128xf32>
    %70 = arith.addf %67, %69 : vector<16x128xf32>
    %cst_42 = arith.constant 0.000000e+00 : f32
    %71 = vector.broadcast %cst_42 : f32 to vector<16x128xf32>
    %72 = arith.maximumf %70, %71 : vector<16x128xf32>
    %c288 = arith.constant 288 : index
    %c0_43 = arith.constant 0 : index
    %73 = vector.load %arg3[%c288, %c0_43] : memref<416x128xbf16, #tpu.memory_space<vmem>>, vector<128x128xbf16>
    %74 = arith.truncf %72 : vector<16x128xf32> to vector<16x128xbf16>
    %cst_44 = arith.constant dense<0.000000e+00> : vector<16x128xf32>
    %75 = tpu.matmul %74, %73, %cst_44 {dimension_numbers = #tpu.dot_dimension_numbers<[1], [0], [0], [1], [0, 0, 1, 1], [], []>} : vector<16x128xbf16>, vector<128x128xbf16>, vector<16x128xf32> -> vector<16x128xf32>
    %c3_45 = arith.constant 3 : index
    %c0_46 = arith.constant 0 : index
    %76 = vector.load %arg4[%c3_45, %c0_46] : memref<4x128xf32, #tpu.memory_space<vmem>>, vector<1x128xf32>
    %77 = vector.broadcast %76 : vector<1x128xf32> to vector<16x128xf32>
    %78 = arith.addf %75, %77 : vector<16x128xf32>
    %c0_47 = arith.constant 0 : index
    %c0_48 = arith.constant 0 : index
    %79 = vector.load %arg5[%c0_47, %c0_48] : memref<16x128xf32, #tpu.memory_space<vmem>>, vector<16x128xf32>
    tpu.vector_store %arg5[%c0_47, %c0_48], %78 {strides = array<i32>} : memref<16x128xf32, #tpu.memory_space<vmem>>, vector<16x128xf32>,
    return
  }
  func.func @transform_0(%arg0: i32) -> (i32, i32, i32) {
    %c0_i32 = arith.constant 0 : i32
    %c0_i32_0 = arith.constant 0 : i32
    %c0_i32_1 = arith.constant 0 : i32
    return %c0_i32, %arg0, %c0_i32_0 : i32, i32, i32
  }
  func.func @transform_1(%arg0: i32) -> (i32, i32) {
    %c0_i32 = arith.constant 0 : i32
    %c0_i32_0 = arith.constant 0 : i32
    return %arg0, %c0_i32 : i32, i32
  }
  func.func @transform_2(%arg0: i32) -> (i32, i32) {
    %c0_i32 = arith.constant 0 : i32
    %c0_i32_0 = arith.constant 0 : i32
    %c0_i32_1 = arith.constant 0 : i32
    return %c0_i32, %c0_i32_0 : i32, i32
  }
  func.func @transform_3(%arg0: i32) -> (i32, i32) {
    %c0_i32 = arith.constant 0 : i32
    %c0_i32_0 = arith.constant 0 : i32
    %c0_i32_1 = arith.constant 0 : i32
    return %c0_i32, %c0_i32_0 : i32, i32
  }
  func.func @transform_4(%arg0: i32) -> (i32, i32) {
    %c0_i32 = arith.constant 0 : i32
    %c0_i32_0 = arith.constant 0 : i32
    return %arg0, %c0_i32 : i32, i32
  }
}

</mosaic_0001>

<bundles_post_ra>
// kernel: tpu_custom_call.1
= control target key start
LH: loop header
LB: loop body
LE: loop exit
PB: predicated region body
PF: predicated region fallthrough
CT: control target
= control target key end

     0   :  { %9 = vsyncpa [#allocation3], 0  ;;  %s1262_s0 = inlined_call_operand.hbm [shape: bf16[6,16,16], index: 0, kind: input, shape index: {}]   ;;  %s1263_s1 = inlined_call_operand.hbm [shape: bf16[16,16], index: 1, kind: input, shape index: {}]   ;;  %s1264_s2 = inlined_call_operand.hbm [shape: bf16[416,128], index: 2, kind: input, shape index: {}]   ;;  %s1265_s3 = inlined_call_operand.vmem [shape: f32[4,128], index: 3, kind: input, shape index: {}]   ;;  %s1266_s4 = inlined_call_operand.hbm [shape: f32[16,128], index: 4, kind: output, shape index: {}]  }
   0x1   :  { %10 = vsyncpa [#allocation6], 0 }
   0x2   :  { %11 = vsyncpa [#allocation4], 0  ;;  %s1145_s15 = smov [#allocation5]   ;;  %s1146_s17 = smov [#allocation2]  }
   0x3   :  { %s29_s16 = sshll.u32 %s1145_s15, 4  ;;  %s17_s18 = sshll.u32 %s1146_s17, 4  ;;  %s30_s16 = int_to_ptr.vmem [resolvable:$true] %s29_s16  ;;  %s18_s18 = int_to_ptr.vmem [resolvable:$true] %s17_s18 }
   0x4   :  { %s1067_s19 = scalar_lea.vmem %s30_s16, 128  ;;  %p1072_p1 = scmp.lt.s32.totalorder %s30_s16, %s30_s16 }
   0x5   :  { %p1068_p0 = scmp.ne.s32.totalorder %s30_s16, %s1067_s19  ;;  %p1073_p2 = scmp.lt.s32.totalorder %s1067_s19, %s1067_s19 }
   0x7   :  { %p1074_p3 = por %p1073_p2, %p1072_p1 }
   0x9   :  { %p1075_p4 = pnand %p1074_p3, %p1068_p0 }
   0xb   :  { %1078 = shalt.err (!%p1075_p4)
}
   0xc   :  { %s1147_s20 = smov 64   ;;  %s1148_s21 = smov 4  }
   0xd   :  { %35 = dma.hbm_to_vmem [thread:$0]  %s1263_s1, 128, %s30_s16, [#allocation6], %s1147_s20, %s1147_s20, %s1148_s21  }
   0xe   :  { %s1087_s24 = scalar_lea.vmem %s18_s18, 768  ;;  %p1092_p6 = scmp.lt.s32.totalorder %s18_s18, %s18_s18 }
   0xf   :  { %p1088_p5 = scmp.ne.s32.totalorder %s18_s18, %s1087_s24  ;;  %p1093_p7 = scmp.lt.s32.totalorder %s1087_s24, %s1087_s24 }
  0x11   :  { %p1094_p8 = por %p1093_p7, %p1092_p6 }
  0x13   :  { %p1095_p9 = pnand %p1094_p8, %p1088_p5 }
  0x15   :  { %1098 = shalt.err (!%p1095_p9)
}
  0x16   :  { %23 = dma.hbm_to_vmem [thread:$0]  %s1262_s0, 768, %s18_s18, [#allocation3], %s1147_s20, %s1147_s20, %s1148_s21  }
  0x17   :  { %s1149_s27 = smov [#allocation7]  }
  0x18   :  { %s41_s28 = sshll.u32 %s1149_s27, 4  ;;  %s42_s28 = int_to_ptr.vmem [resolvable:$true] %s41_s28 }
  0x19   :  { %s1107_s29 = scalar_lea.vmem %s42_s28, 3328  ;;  %p1112_p11 = scmp.lt.s32.totalorder %s42_s28, %s42_s28 }
  0x1a   :  { %p1108_p10 = scmp.ne.s32.totalorder %s42_s28, %s1107_s29  ;;  %p1113_p12 = scmp.lt.s32.totalorder %s1107_s29, %s1107_s29 }
  0x1c   :  { %p1114_p13 = por %p1113_p12, %p1112_p11 }
  0x1e   :  { %p1115_p0 = pnand %p1114_p13, %p1108_p10 }
  0x20   :  { %1118 = shalt.err (!%p1115_p0)
}
  0x21   :  { %47 = dma.hbm_to_vmem [thread:$0]  %s1264_s2, 3328, %s42_s28, [#allocation6], %s1147_s20, %s1147_s20, %s1148_s21  }
  0x22   :  { %1139 = dma.done.wait [#allocation3], 768  }
  0x23   :  { %1140 = vsyncadd [#allocation3], 4294966528 }
  0x24   :  { %1141 = dma.done.wait [#allocation6], 3456  }
  0x25   :  { %1142 = vsyncadd [#allocation6], 4294963840  ;;  %v1150_v0 = vmov 0.0   ;;  %vm1151_vm0 = vmmov 0   ;;  %v1026_v1 = vld [vmem:[#allocation7] sm:$0xff]   ;;  %v1027_v2 = vld [vmem:[#allocation2] sm:$0xff]  }
  0x26   :  { %914 = vmatprep.subr.bf16.mxu0 %v1150_v0  ;;  %916 = vmatprep.mubr.msk.bf16.mxu0 %vm1151_vm0, %v1150_v0  ;;  %vm80_vm1 = vcmask 130048   ;;  %v1029_v3 = vld [vmem:[#allocation2 + $0x18] sm:$0xff]   ;;  %v1028_v4 = vld [vmem:[#allocation2 + $0x8] sm:$0xff]   ;;  %v1030_v6 = vld [vmem:[#allocation2 + $0x10] sm:$0xff]   ;;  %s1152_s11 = smov [#allocation8]  }
  0x27   :  { %932 = vmatprep.subr.bf16.mxu1 %v1150_v0  ;;  %934 = vmatprep.mubr.msk.bf16.mxu1 %vm1151_vm0, %v1150_v0  ;;  %v1031_v5 = vld [vmem:[#allocation2 + $0x28] sm:$0xff]   ;;  %v1032_v7 = vld [vmem:[#allocation2 + $0x20] sm:$0xff]   ;;  %v1033_v8 = vld [vmem:[#allocation7 + $0x40] sm:$0xff]   ;;  %s816_s12 = sshll.u32 %s1152_s11, 4  ;;  %s817_s12 = int_to_ptr.vmem [resolvable:$true] %s816_s12 }
  0x28   :  { %915 = vmatpush3.bf16.msra.mxu0 %v1026_v1  ;;  %933 = vmatpush3.bf16.msra.mxu1 %v1026_v1  ;;  %v1034_v9 = vld [vmem:[#allocation7 + $0x38] sm:$0xff]   ;;  %v1035_v10 = vld [vmem:[#allocation7 + $0x30] sm:$0xff]   ;;  %v1036_v11 = vld [vmem:[#allocation7 + $0x28] sm:$0xff]   ;;  %s1119_s13 = scalar_lea.vmem %s817_s12, 256  ;;  %p1124_p2 = scmp.lt.s32.totalorder %s817_s12, %s817_s12 }
  0x29   :  { %920 = vmatprep.subr.bf16.mxu0 %v1150_v0  ;;  %944 = vmatprep.subr.bf16.mxu1 %v1150_v0  ;;  %v1037_v12 = vld [vmem:[#allocation7 + $0x20] sm:$0xff]   ;;  %v1038_v13 = vld [vmem:[#allocation7 + $0x18] sm:$0xff]   ;;  %v1039_v14 = vld [vmem:[#allocation7 + $0x48] sm:$0xff]   ;;  %p1120_p1 = scmp.ne.s32.totalorder %s817_s12, %s1119_s13  ;;  %p1125_p3 = scmp.lt.s32.totalorder %s1119_s13, %s1119_s13 }
  0x2a   :  { %v1040_v15 = vld [vmem:[#allocation7 + $0x10] sm:$0xff]   ;;  %v1041_v16 = vld [vmem:[#allocation5] sm:$0xff]   ;;  %v1042_v17 = vld [vmem:[#allocation7 + $0x8] sm:$0xff]  }
  0x2b   :  { %917 = vmatmul.mubr.msk.bf16.vlgmr.msra.gmra.mxu0 %vm80_vm1, %v1027_v2  ;;  %935 = vmatmul.mubr.msk.bf16.vlgmr.msra.gmra.mxu1 %vm80_vm1, %v1029_v3  ;;  %v1043_v18 = vld [vmem:[#allocation7 + $0x88] sm:$0xff]   ;;  %v1044_v19 = vld [vmem:[#allocation7 + $0x80] sm:$0xff]   ;;  %v1045_v20 = vld [vmem:[#allocation7 + $0x78] sm:$0xff]   ;;  %p1126_p4 = por %p1125_p3, %p1124_p2 }
  0x2c   :  { %921 = vmatpush3.bf16.msra.mxu0 %v1026_v1  ;;  %922 = vmatprep.mubr.msk.bf16.mxu0 %vm1151_vm0, %v1150_v0  ;;  %v1046_v21 = vld [vmem:[#allocation7 + $0x70] sm:$0xff]   ;;  %v1047_v22 = vld [vmem:[#allocation7 + $0x68] sm:$0xff]  }
  0x2d   :  { %926 = vmatprep.subr.bf16.mxu0 %v1150_v0  ;;  %945 = vmatpush3.bf16.msra.mxu1 %v1026_v1  ;;  %v829_v35 = vld [vmem:[%s1265_s3] ss:$0 sm:$0xff]  ;;  %p1127_p5 = pnand %p1126_p4, %p1120_p1 }
  0x2e   :  { %946 = vmatprep.mubr.msk.bf16.mxu1 %vm1151_vm0, %v1150_v0  ;;  %956 = vmatprep.subr.bf16.mxu1 %v1150_v0 }
  0x33   :  { %923 = vmatmul.mubr.msk.bf16.vlgmr.msra.gmra.mxu0 %vm80_vm1, %v1028_v4  ;;  %947 = vmatmul.mubr.msk.bf16.vlgmr.msra.gmra.mxu1 %vm80_vm1, %v1031_v5 }
  0x34   :  { %927 = vmatpush3.bf16.msra.mxu0 %v1026_v1  ;;  %928 = vmatprep.mubr.msk.bf16.mxu0 %vm1151_vm0, %v1150_v0 }
  0x35   :  { %938 = vmatprep.subr.bf16.mxu0 %v1150_v0  ;;  %972 = vmatprep.mubr.msk.bf16.mxu1 %vm1151_vm0, %v1150_v0 }
  0x36   :  { %957 = vmatpush3.bf16.msra.mxu1 %v1033_v8 }
  0x37   :  { %958 = vmatprep.subr.bf16.mxu1 %v1150_v0 }
  0x3a   :  { %959 = vmatpush3.bf16.msra.mxu1 %v1034_v9 }
  0x3b   :  { %929 = vmatmul.mubr.msk.bf16.vlgmr.msra.gmra.mxu0 %vm80_vm1, %v1030_v6  ;;  %960 = vmatprep.subr.bf16.mxu1 %v1150_v0 }
  0x3c   :  { %939 = vmatpush3.bf16.msra.mxu0 %v1026_v1  ;;  %940 = vmatprep.mubr.msk.bf16.mxu0 %vm1151_vm0, %v1150_v0 }
  0x3d   :  { %950 = vmatprep.subr.bf16.mxu0 %v1150_v0 }
  0x3e   :  { %961 = vmatpush3.bf16.msra.mxu1 %v1035_v10 }
  0x3f   :  { %962 = vmatprep.subr.bf16.mxu1 %v1150_v0 }
  0x42   :  { %963 = vmatpush3.bf16.msra.mxu1 %v1036_v11 }
  0x43   :  { %941 = vmatmul.mubr.msk.bf16.vlgmr.msra.gmra.mxu0 %vm80_vm1, %v1032_v7  ;;  %964 = vmatprep.subr.bf16.mxu1 %v1150_v0 }
  0x44   :  { %952 = vmatprep.mubr.msk.bf16.mxu0 %vm1151_vm0, %v1150_v0  ;;  %951 = vmatpush3.bf16.msra.mxu0 %v1039_v14 }
  0x45   :  { %976 = vmatprep.subr.bf16.mxu0 %v1150_v0 }
  0x46   :  { %965 = vmatpush3.bf16.msra.mxu1 %v1037_v12 }
  0x47   :  { %966 = vmatprep.subr.bf16.mxu1 %v1150_v0 }
  0x4a   :  { %967 = vmatpush3.bf16.msra.mxu1 %v1038_v13 }
  0x4b   :  { %968 = vmatprep.subr.bf16.mxu1 %v1150_v0  ;;  %953 = vmatmul.mubr.msk.bf16.vlgmr.msra.gmra.mxu0 %vm80_vm1, %v1041_v16 }
  0x4c   :  { %992 = vmatprep.mubr.msk.bf16.mxu0 %vm1151_vm0, %v1150_v0  ;;  %977 = vmatpush3.bf16.msra.mxu0 %v1043_v18 }
  0x4d   :  { %978 = vmatprep.subr.bf16.mxu0 %v1150_v0 }
  0x4e   :  { %969 = vmatpush3.bf16.msra.mxu1 %v1040_v15 }
  0x4f   :  { %970 = vmatprep.subr.bf16.mxu1 %v1150_v0 }
  0x50   :  { %979 = vmatpush3.bf16.msra.mxu0 %v1044_v19 }
  0x51   :  { %980 = vmatprep.subr.bf16.mxu0 %v1150_v0 }
  0x52   :  { %971 = vmatpush3.bf16.msra.mxu1 %v1042_v17 }
  0x53   :  { %996 = vmatprep.subr.bf16.mxu1 %v1150_v0 }
  0x54   :  { %981 = vmatpush3.bf16.msra.mxu0 %v1045_v20 }
  0x55   :  { %982 = vmatprep.subr.bf16.mxu0 %v1150_v0 }
  0x58   :  { %983 = vmatpush3.bf16.msra.mxu0 %v1046_v21 }
  0x59   :  { %984 = vmatprep.subr.bf16.mxu0 %v1150_v0 }
  0x5c   :  { %985 = vmatpush3.bf16.msra.mxu0 %v1047_v22 }
  0x5d   :  { %986 = vmatprep.subr.bf16.mxu0 %v1150_v0 }
  0xeb   :  { %v118_v23 = vpop.f32.mrf.mxu0  ;;  %v286_v24 = vpop.f32.mrf.mxu1 }
  0xec   :  { %v119_v41 = vadd.f32 %v829_v35, %v118_v23  ;;  %v287_v49 = vadd.f32 %v829_v35, %v286_v24 }
  0xed   :  { %v918_v25 = vpop.f32.mrf.mxu0  ;;  %v936_v26 = vpop.f32.mrf.mxu1 }
  0xee   :  { %v125_v47 = vmax.f32 %v119_v41, 0.0  ;;  %v293_v57 = vmax.f32 %v287_v49, 0.0  ;;  %v1048_v26 = vld [vmem:[#allocation7 + $0x60] sm:$0xff]   ;;  %v855_v49 = vld [vmem:[%s1265_s3 + $0x2] ss:$0 sm:$0xff] }
  0xef   :  { %v121_v27 = vpop.f32.mrf.mxu0  ;;  %v289_v28 = vpop.f32.mrf.mxu1  ;;  %987 = vmatpush3.bf16.msra.mxu0 %v1048_v26 }
  0xf0   :  { %v122_v48 = vadd.f32 %v829_v35, %v121_v27  ;;  %v290_v60 = vadd.f32 %v829_v35, %v289_v28  ;;  %988 = vmatprep.subr.bf16.mxu0 %v1150_v0  ;;  %v1049_v27 = vld [vmem:[#allocation7 + $0x58] sm:$0xff]   ;;  %v1050_v28 = vld [vmem:[#allocation7 + $0x50] sm:$0xff]  }
  0xf1   :  { %v919_v29 = vpop.f32.mrf.mxu0  ;;  %v937_v30 = vpop.f32.mrf.mxu1 }
  0xf2   :  { %v126_v56 = vmax.f32 %v122_v48, 0.0  ;;  %v294_v6 = vmax.f32 %v290_v60, 0.0  ;;  %v1051_v29 = vld [vmem:[#allocation7 + $0xc8] sm:$0xff]   ;;  %v1052_v30 = vld [vmem:[#allocation7 + $0xc0] sm:$0xff]   ;;  %v1058_v48 = vld [vmem:[#allocation7 + $0x90] sm:$0xff]  }
  0xf3   :  { %v174_v31 = vpop.f32.mrf.mxu0  ;;  %v398_v32 = vpop.f32.mrf.mxu1  ;;  %989 = vmatpush3.bf16.msra.mxu0 %v1049_v27 }
  0xf4   :  { %v175_v38 = vadd.f32 %v829_v35, %v174_v31  ;;  %v399_v63 = vadd.f32 %v829_v35, %v398_v32  ;;  %990 = vmatprep.subr.bf16.mxu0 %v1150_v0  ;;  %v1053_v31 = vld [vmem:[#allocation7 + $0xb8] sm:$0xff]   ;;  %v1054_v32 = vld [vmem:[#allocation7 + $0xb0] sm:$0xff]  }
  0xf5   :  { %v924_v33 = vpop.f32.mrf.mxu0  ;;  %v948_v34 = vpop.f32.mrf.mxu1 }
  0xf6   :  { %v181_v43 = vmax.f32 %v175_v38, 0.0  ;;  %v405_v8 = vmax.f32 %v399_v63, 0.0  ;;  %v1055_v33 = vld [vmem:[#allocation7 + $0xa8] sm:$0xff]  }
  0xf7   :  { %v177_v36 = vpop.f32.mrf.mxu0  ;;  %v401_v37 = vpop.f32.mrf.mxu1  ;;  %991 = vmatpush3.bf16.msra.mxu0 %v1050_v28 }
  0xf8   :  { %v178_v44 = vadd.f32 %v829_v35, %v177_v36  ;;  %v183_v52 = vadd.f32 %v181_v43, %v125_v47  ;;  %v402_v10 = vadd.f32 %v829_v35, %v401_v37  ;;  %v854_v36 = vld [vmem:[%s1265_s3 + $0x1] ss:$0 sm:$0xff]  ;;  %v1057_v47 = vld [vmem:[#allocation7 + $0x98] sm:$0xff]  }
  0xf9   :  { %v925_v39 = vpop.f32.mrf.mxu0  ;;  %v949_v40 = vpop.f32.mrf.mxu1 }
  0xfa   :  { %v182_v53 = vmax.f32 %v178_v44, 0.0  ;;  %v406_v16 = vmax.f32 %v402_v10, 0.0 }
  0xfb   :  { %v230_v42 = vpop.f32.mrf.mxu0 }
  0xfc   :  { %v231_v45 = vadd.f32 %v829_v35, %v230_v42  ;;  %v184_v62 = vadd.f32 %v182_v53, %v126_v56 }
  0xfd   :  { %v930_v46 = vpop.f32.mrf.mxu0 }
  0xfe   :  { %v237_v50 = vmax.f32 %v231_v45, 0.0  ;;  %v1056_v46 = vld [vmem:[#allocation7 + $0xa0] sm:$0xff]  }
  0xff   :  { %v233_v51 = vpop.f32.mrf.mxu0 }
 0x100   :  { %v234_v54 = vadd.f32 %v829_v35, %v233_v51  ;;  %v239_v58 = vadd.f32 %v237_v50, %v183_v52 }
 0x101   :  { %v931_v55 = vpop.f32.mrf.mxu0 }
 0x102   :  { %v238_v59 = vmax.f32 %v234_v54, 0.0  ;;  %v295_v4 = vadd.f32 %v293_v57, %v239_v58 }
 0x103   :  { %v342_v61 = vpop.f32.mrf.mxu0 }
 0x104   :  { %v343_v1 = vadd.f32 %v829_v35, %v342_v61  ;;  %v240_v3 = vadd.f32 %v238_v59, %v184_v62 }
 0x105   :  { %v942_v2 = vpop.f32.mrf.mxu0 }
 0x106   :  { %v349_v5 = vmax.f32 %v343_v1, 0.0  ;;  %v296_v13 = vadd.f32 %v294_v6, %v240_v3 }
 0x107   :  { %v345_v7 = vpop.f32.mrf.mxu0 }
 0x108   :  { %v351_v9 = vadd.f32 %v349_v5, %v295_v4  ;;  %v346_v11 = vadd.f32 %v829_v35, %v345_v7 }
 0x109   :  { %v943_v12 = vpop.f32.mrf.mxu0 }
 0x10a   :  { %v350_v14 = vmax.f32 %v346_v11, 0.0  ;;  %v407_v15 = vadd.f32 %v405_v8, %v351_v9 }
 0x10b   :  { %v480_v22 = vpop.f32.mrf.mxu0 }
 0x10c   :  { %v352_v17 = vadd.f32 %v350_v14, %v296_v13  ;;  %v409_v19 = vmul.f32 0.16666667, %v407_v15 }
 0x10d   :  { %v954_v23 = vpop.f32.mrf.mxu0 }
 0x10e   :  { %v408_v18 = vadd.f32 %v406_v16, %v352_v17 }
 0x10f   :  { %v483_v24 = vpop.f32.mrf.mxu0 }
 0x110   :  { %v410_v20 = vmul.f32 0.16666667, %v408_v18 }
 0x111   :  { %v955_v25 = vpop.f32.mrf.mxu0 }
 0x112   :  { %v411_v21 = vpack.c.bf16 %v410_v20, %v409_v19 }
 0x114   :  { %973 = vmatmul.mubr.bf16.vlgmr.msra.gmra.mxu1 %v411_v21 }
 0x115   :  { %1012 = vmatprep.mubr.msk.bf16.mxu1 %vm1151_vm0, %v1150_v0  ;;  %997 = vmatpush3.bf16.msra.mxu1 %v1051_v29 }
 0x116   :  { %998 = vmatprep.subr.bf16.mxu1 %v1150_v0 }
 0x119   :  { %999 = vmatpush3.bf16.msra.mxu1 %v1052_v30 }
 0x11a   :  { %1000 = vmatprep.subr.bf16.mxu1 %v1150_v0 }
 0x11d   :  { %1001 = vmatpush3.bf16.msra.mxu1 %v1053_v31 }
 0x11e   :  { %1002 = vmatprep.subr.bf16.mxu1 %v1150_v0 }
 0x121   :  { %1003 = vmatpush3.bf16.msra.mxu1 %v1054_v32 }
 0x122   :  { %1004 = vmatprep.subr.bf16.mxu1 %v1150_v0 }
 0x125   :  { %1005 = vmatpush3.bf16.msra.mxu1 %v1055_v33 }
 0x126   :  { %1006 = vmatprep.subr.bf16.mxu1 %v1150_v0 }
 0x129   :  { %1007 = vmatpush3.bf16.msra.mxu1 %v1056_v46 }
 0x12a   :  { %1008 = vmatprep.subr.bf16.mxu1 %v1150_v0 }
 0x12d   :  { %1009 = vmatpush3.bf16.msra.mxu1 %v1057_v47 }
 0x12e   :  { %1010 = vmatprep.subr.bf16.mxu1 %v1150_v0  ;;  %v864_v0 = vld [vmem:[%s1265_s3 + $0x3] ss:$0 sm:$0xff] }
 0x131   :  { %1011 = vmatpush3.bf16.msra.mxu1 %v1058_v48 }
 0x1d4   :  { %v569_v34 = vpop.f32.mrf.mxu1 }
 0x1d5   :  { %v570_v35 = vadd.f32 %v569_v34, %v480_v22 }
 0x1d6   :  { %v974_v37 = vpop.f32.mrf.mxu1 }
 0x1d7   :  { %v581_v39 = vadd.f32 %v854_v36, %v570_v35 }
 0x1d8   :  { %v572_v38 = vpop.f32.mrf.mxu1 }
 0x1d9   :  { %v573_v40 = vadd.f32 %v572_v38, %v483_v24  ;;  %v583_v43 = vmax.f32 %v581_v39, 0.0 }
 0x1da   :  { %v975_v41 = vpop.f32.mrf.mxu1 }
 0x1db   :  { %v582_v42 = vadd.f32 %v854_v36, %v573_v40 }
 0x1dd   :  { %v584_v44 = vmax.f32 %v582_v42, 0.0 }
 0x1df   :  { %v601_v45 = vpack.c.bf16 %v584_v44, %v583_v43 }
 0x1e1   :  { %993 = vmatmul.mubr.bf16.vlgmr.msra.gmra.mxu0 %v601_v45 }
 0x2a1   :  { %v689_v50 = vpop.f32.mrf.mxu0 }
 0x2a2   :  { %v690_v52 = vadd.f32 %v855_v49, %v689_v50 }
 0x2a3   :  { %v994_v51 = vpop.f32.mrf.mxu0 }
 0x2a4   :  { %v696_v56 = vmax.f32 %v690_v52, 0.0 }
 0x2a5   :  { %v692_v53 = vpop.f32.mrf.mxu0 }
 0x2a6   :  { %v693_v54 = vadd.f32 %v855_v49, %v692_v53 }
 0x2a7   :  { %v995_v55 = vpop.f32.mrf.mxu0 }
 0x2a8   :  { %v697_v57 = vmax.f32 %v693_v54, 0.0 }
 0x2aa   :  { %v714_v58 = vpack.c.bf16 %v697_v57, %v696_v56 }
 0x2ac   :  { %1013 = vmatmul.mubr.bf16.vlgmr.msra.gmra.mxu1 %v714_v58 }
 0x36c   :  { %v802_v59 = vpop.f32.mrf.mxu1 }
 0x36d   :  { %v803_v60 = vadd.f32 %v864_v0, %v802_v59 }
 0x36e   :  { %v1014_v61 = vpop.f32.mrf.mxu1 }
 0x36f   :  { %809 = vst [vmem:[#allocation8] sm:$0xff] %v803_v60 }
 0x370   :  { %v805_v62 = vpop.f32.mrf.mxu1 }
 0x371   :  { %v806_v63 = vadd.f32 %v864_v0, %v805_v62 }
 0x372   :  { %v1015_v1 = vpop.f32.mrf.mxu1 }
 0x373   :  { %810 = vst [vmem:[#allocation8 + $0x8] sm:$0xff] %v806_v63 }
 0x374   :  { %1130 = shalt.err (!%p1127_p5)
}
 0x375   :  { %s1153_s14 = smov 128   ;;  %s1154_s3 = smov 8  }
 0x376   :  { %822 = dma.vmem_to_hbm [thread:$0]  %s817_s12, 256, %s1266_s4, [#allocation4], %s1153_s14, %s1153_s14, %s1154_s3  }
 0x377   :  { %1143 = dma.done.wait [#allocation4], 256  }
 0x378   :  { %1144 = vsyncadd [#allocation4], 4294967040 }
 0x379   :  { %826 = vsyncpa [#allocation3], 1 }
 0x37a   :  { %827 = vsyncpa [#allocation6], 1 }
 0x37b   :  { %828 = vsyncpa [#allocation4], 1 }

</bundles_post_ra>
